<compile_context>
chip_gen: v5e
topology: v5e:2x2
jax: 0.10.0
libtpu: 0.0.40
codegen_flags: <defaults>
</compile_context>

<pallas_src>
import jax
import jax.numpy as jnp
from jax.experimental import pallas as pl
from jax.experimental.pallas import tpu as pltpu


def encoder_kernel(feat_ref, mask_ref, w_attn_ref, b_attn_ref,
                   w_cls_t_ref, b_cls_ref, out_ref):
    feat = feat_ref[...]                                   # (bt, S, H), source dtype
    bt, seq, hidden = feat.shape
    cdt = feat.dtype                                       # MXU operand dtype

    # Attention scores on the MXU: scores[b, s] = sum_h W_attn[h] * feat[b, s, h] + b.
    # The singleton q axis exists only at the contraction; the result is squeezed to
    # 2-D immediately so all elementwise math runs on sublane-packed vregs.
    w_attn = jnp.broadcast_to(w_attn_ref[...].astype(cdt)[None], (bt, 1, hidden))
    scores = jnp.einsum("bqh,bsh->bqs", w_attn, feat,
                        preferred_element_type=jnp.float32).reshape(bt, seq)
    scores = scores + b_attn_ref[0, 0]                     # scalar bias from SMEM

    # Softmax over the sequence axis (lane axis), 8 batch rows per vreg; f32 elementwise
    # (v5e-safe), reciprocal routed to the EUP.
    m = jnp.max(scores, axis=-1, keepdims=True)
    e = jnp.exp(scores - m)
    attn = e * pl.reciprocal(jnp.sum(e, axis=-1, keepdims=True), approx=True)   # (bt, S)

    # Padding mask applied after the softmax (matches the PyTorch module as written).
    w = (attn * mask_ref[...].astype(jnp.float32)).astype(cdt)                  # (bt, S)

    # Masked pooled sum over S as a batched MXU contraction (no (bt,S,H) temporary);
    # singleton inserted only at the dot, squeezed right after.
    pooled = jnp.einsum("bqs,bsh->bqh", w[:, None, :], feat,
                        preferred_element_type=jnp.float32).reshape(bt, hidden)  # f32

    # Classifier (dropout = identity at eval): plain 2-D (bt,H)@(H,L) matmul, no
    # weight broadcast, full-M MXU cadence.
    logits = jnp.dot(pooled, w_cls_t_ref[...], preferred_element_type=jnp.float32)
    out_ref[...] = (logits + b_cls_ref[...]).astype(out_ref.dtype)               # (bt, L)


def _round_up(x, m):
    return ((x + m - 1) // m) * m


def _vmem_budgets():
    """(pipelined-block byte budget, vmem_limit_bytes), sized per TPU generation."""
    try:
        cap = int(pltpu.get_tpu_info().vmem_capacity_bytes)
    except Exception:
        cap = 64 * 1024 * 1024                 # assume the smallest (v7x) if unknown
    # v5e/v6e (128 MiB VMEM): ~40 MiB of double-buffered blocks, 96 MiB scoped limit.
    # v7x      (64 MiB VMEM): ~24 MiB of double-buffered blocks, 48 MiB scoped limit.
    block_budget = min(cap * 3 // 8, 40 * 1024 * 1024)
    vmem_limit = min(cap * 3 // 4, 112 * 1024 * 1024)
    return block_budget, vmem_limit


def _pick_batch_tile(batch, seq, hidden, num_labels, feat_itemsize, mask_itemsize,
                     block_budget_bytes):
    """Largest batch tile whose *padded* double-buffered VMEM footprint fits the budget."""
    SUB, LANE = 8, 128
    feat_row = _round_up(seq, SUB) * _round_up(hidden, LANE) * feat_itemsize
    mask_row = _round_up(seq, LANE) * mask_itemsize
    out_row = _round_up(num_labels, LANE) * 4
    pipelined_per_row = 2 * (feat_row + mask_row + out_row)          # double-buffered blocks
    # In-kernel f32 temporaries per batch row: 2-D scores/attn/weights/pooled rows, plus
    # one padded (8,128) vreg row each for the (bt,1,H)/(bt,1,S)/(bt,1,H) slabs around
    # the q=1 batched contractions.
    temps_per_row = (3 * _round_up(seq, LANE) + 2 * _round_up(hidden, LANE)) * 4 \
        + 3 * SUB * LANE * 4
    per_row = pipelined_per_row + temps_per_row
    # Resident weight/bias blocks (also double-buffered by the pipeline).
    fixed = 2 * 4 * (SUB * _round_up(hidden, LANE)                                 # W_attn
                     + _round_up(hidden, SUB) * _round_up(num_labels, LANE)        # W_cls^T
                     + SUB * _round_up(num_labels, LANE))                          # b_cls
    avail = max(block_budget_bytes - fixed, per_row)
    bt = int(max(1, min(batch, avail // per_row)))
    while batch % bt:                                                # exact blocks only
        bt -= 1
    # v7x has 2 TensorCores/chip: keep >= 2 grid steps so the "parallel" batch axis feeds
    # both cores, as long as the tile stays a healthy sublane multiple.
    if bt == batch and batch >= 16 and batch % 2 == 0:
        bt = batch // 2
    return bt


def custom_encoder_forward(features, mask, w_attn, b_attn, w_cls, b_cls,
                           *, cast_features_to_bf16=False):
    features = jnp.asarray(features)
    if cast_features_to_bf16 and features.dtype == jnp.float32:
        # Optional: halves the dominant HBM stream; accumulation stays f32 in-kernel.
        features = features.astype(jnp.bfloat16)
    B, S, H = features.shape
    L = int(w_cls.shape[0])

    block_budget, vmem_limit = _vmem_budgets()
    bt = _pick_batch_tile(B, S, H, L, features.dtype.itemsize, 4, block_budget)
    grid = (B // bt,)

    # Layout plumbing in the wrapper (no in-kernel weight relayouts):
    mask2 = jnp.asarray(mask).astype(jnp.float32).reshape(B, S)        # 2-D, lane-major over S
    w_attn2 = jnp.asarray(w_attn, jnp.float32).reshape(1, H)
    b_attn2 = jnp.asarray(b_attn, jnp.float32).reshape(1, 1)
    w_cls_t = jnp.asarray(w_cls, jnp.float32).reshape(L, H).T          # pre-transposed (H, L)
    b_cls2 = jnp.asarray(b_cls, jnp.float32).reshape(1, L)

    out = pl.pallas_call(
        encoder_kernel,
        out_shape=jax.ShapeDtypeStruct((B, L), jnp.float32),
        grid=grid,
        in_specs=[
            pl.BlockSpec((bt, S, H), lambda i: (i, 0, 0)),             # features (source dtype)
            pl.BlockSpec((bt, S), lambda i: (i, 0)),                   # mask (2-D block)
            pl.BlockSpec((1, H), lambda i: (0, 0)),                    # W_attn
            pl.BlockSpec(memory_space=pltpu.MemorySpace.SMEM),         # b_attn scalar
            pl.BlockSpec((H, L), lambda i: (0, 0)),                    # W_cls^T
            pl.BlockSpec((1, L), lambda i: (0, 0)),                    # b_cls
        ],
        out_specs=pl.BlockSpec((bt, L), lambda i: (i, 0)),             # 2-D, lane-dense stores
        compiler_params=pltpu.CompilerParams(
            dimension_semantics=("parallel",),     # v7x: shard batch tiles across 2 TCs
            vmem_limit_bytes=vmem_limit,
        ),
    )(features, mask2, w_attn2, b_attn2, w_cls_t, b_cls2)
    return out


def reference_forward(features, mask, w_attn, b_attn, w_cls, b_cls):
    # Pure-JAX reference mirroring the PyTorch module (eval mode).
    f = features.astype(jnp.float32)
    scores = jnp.einsum("bsh,h->bs", f, w_attn.reshape(-1).astype(jnp.float32))[..., None]
    scores = scores + b_attn.astype(jnp.float32)
    attn = jax.nn.softmax(scores, axis=1)
    out = f * attn
    masked = out * mask[..., None].astype(jnp.float32)
    pooled = masked.sum(axis=1)
    return pooled @ w_cls.T.astype(jnp.float32) + b_cls.astype(jnp.float32)


if __name__ == "__main__":
    # Small shapes consistent with the module: batch=2, seq=8, hidden=32, labels=4
    B, S, H, L = 2, 8, 32, 4
    key = jax.random.PRNGKey(0)
    k_feat, k_mask, k_wa, k_ba, k_wc, k_bc = jax.random.split(key, 6)

    features = jax.random.normal(k_feat, (B, S, H), dtype=jnp.float32)
    # binary padding mask (B, S): 1 = keep, 0 = pad
    mask = (jax.random.uniform(k_mask, (B, S)) > 0.25).astype(jnp.float32)

    # Deterministic parameter init (uniform, PyTorch-Linear-like scale)
    w_attn = jax.random.uniform(k_wa, (1, H), minval=-1.0 / jnp.sqrt(H),
                                maxval=1.0 / jnp.sqrt(H), dtype=jnp.float32)
    b_attn = jax.random.uniform(k_ba, (1,), minval=-1.0 / jnp.sqrt(H),
                                maxval=1.0 / jnp.sqrt(H), dtype=jnp.float32)
    w_cls = jax.random.uniform(k_wc, (L, H), minval=-1.0 / jnp.sqrt(H),
                               maxval=1.0 / jnp.sqrt(H), dtype=jnp.float32)
    b_cls = jax.random.uniform(k_bc, (L,), minval=-1.0 / jnp.sqrt(H),
                               maxval=1.0 / jnp.sqrt(H), dtype=jnp.float32)

    logits = custom_encoder_forward(features, mask, w_attn, b_attn, w_cls, b_cls)
    jax.block_until_ready(logits)

    ref = reference_forward(features, mask, w_attn, b_attn, w_cls, b_cls)
    assert logits.shape == (B, L)
    # approx=True reciprocal in the softmax denom -> loosen tolerance vs exact reference.
    assert jnp.allclose(logits, ref, atol=2e-3, rtol=2e-3), (logits, ref)

    print("KERNEL_OK")
</pallas_src>

<mosaic_0001>
module attributes {stable_mosaic.version = 11 : i64} {
  func.func @encoder_kernel(%arg0: i32, %arg1: memref<2x8x32xf32, #tpu.memory_space<vmem>>, %arg2: memref<2x8xf32, #tpu.memory_space<vmem>>, %arg3: memref<1x32xf32, #tpu.memory_space<vmem>>, %arg4: memref<1x1xf32, #tpu.memory_space<smem>>, %arg5: memref<32x4xf32, #tpu.memory_space<vmem>>, %arg6: memref<1x4xf32, #tpu.memory_space<vmem>>, %arg7: memref<2x4xf32, #tpu.memory_space<vmem>>) attributes {dimension_semantics = [#tpu.dimension_semantics<parallel>], iteration_bounds = array<i64: 1>, scalar_prefetch = 0 : i64, scratch_operands = 0 : i64, tpu.core_type = #tpu.core_type<tc>, window_params = [{transform_indices = @transform_0, window_bounds = array<i64: 2, 8, 32>}, {transform_indices = @transform_1, window_bounds = array<i64: 2, 8>}, {pipeline_mode = #tpu.pipeline_mode<synchronous>, transform_indices = @transform_2, window_bounds = array<i64: 1, 32>}, {transform_indices = @transform_3, window_bounds = array<i64: 1, 1>}, {pipeline_mode = #tpu.pipeline_mode<synchronous>, transform_indices = @transform_4, window_bounds = array<i64: 32, 4>}, {pipeline_mode = #tpu.pipeline_mode<synchronous>, transform_indices = @transform_5, window_bounds = array<i64: 1, 4>}, {transform_indices = @transform_6, window_bounds = array<i64: 2, 4>}]} {
    %c0 = arith.constant 0 : index
    %c0_0 = arith.constant 0 : index
    %c0_1 = arith.constant 0 : index
    %0 = vector.load %arg1[%c0, %c0_0, %c0_1] : memref<2x8x32xf32, #tpu.memory_space<vmem>>, vector<2x8x32xf32>
    %c0_2 = arith.constant 0 : index
    %c0_3 = arith.constant 0 : index
    %1 = vector.load %arg3[%c0_2, %c0_3] : memref<1x32xf32, #tpu.memory_space<vmem>>, vector<1x32xf32>
    %2 = vector.shape_cast %1 : vector<1x32xf32> to vector<1x1x32xf32>
    %3 = vector.shape_cast %2 : vector<1x1x32xf32> to vector<1x1x32xf32>
    %4 = vector.broadcast %3 : vector<1x1x32xf32> to vector<2x1x32xf32>
    "tpu.trace_start"() <{level = 10 : i32, message = "bqh,bsh->bqs"}> : () -> ()
    %cst = arith.constant dense<0.000000e+00> : vector<2x1x8xf32>
    %5 = tpu.matmul %4, %0, %cst {dimension_numbers = #tpu.dot_dimension_numbers<[2], [2], [1], [1], [0, 0, 0, 1, 1, 1], [0], [0]>} : vector<2x1x32xf32>, vector<2x8x32xf32>, vector<2x1x8xf32> -> vector<2x1x8xf32>
    "tpu.trace_stop"() : () -> ()
    %6 = vector.shape_cast %5 : vector<2x1x8xf32> to vector<2x8xf32>
    %c0_4 = arith.constant 0 : index
    %c0_5 = arith.constant 0 : index
    %7 = memref.load %arg4[%c0_4, %c0_5] : memref<1x1xf32, #tpu.memory_space<smem>>
    %8 = vector.broadcast %7 : f32 to vector<2x8xf32>
    %9 = arith.addf %6, %8 : vector<2x8xf32>
    %cst_6 = arith.constant dense<0xFF800000> : vector<2xf32>
    %10 = vector.multi_reduction <maximumf>, %9, %cst_6 [1] : vector<2x8xf32> to vector<2xf32>
    %11 = vector.shape_cast %10 : vector<2xf32> to vector<2x1xf32>
    %12 = vector.broadcast %11 : vector<2x1xf32> to vector<2x8xf32>
    %13 = arith.subf %9, %12 : vector<2x8xf32>
    %14 = math.exp %13 : vector<2x8xf32>
    %cst_7 = arith.constant dense<0.000000e+00> : vector<2xf32>
    %15 = vector.multi_reduction <add>, %14, %cst_7 [1] : vector<2x8xf32> to vector<2xf32>
    %16 = vector.shape_cast %15 : vector<2xf32> to vector<2x1xf32>
    %17 = tpu.reciprocal %16 {approx = true} : vector<2x1xf32> -> vector<2x1xf32>
    %18 = vector.broadcast %17 : vector<2x1xf32> to vector<2x8xf32>
    %19 = arith.mulf %14, %18 : vector<2x8xf32>
    %c0_8 = arith.constant 0 : index
    %c0_9 = arith.constant 0 : index
    %20 = vector.load %arg2[%c0_8, %c0_9] : memref<2x8xf32, #tpu.memory_space<vmem>>, vector<2x8xf32>
    %21 = arith.mulf %19, %20 : vector<2x8xf32>
    %22 = vector.shape_cast %21 : vector<2x8xf32> to vector<2x1x8xf32>
    "tpu.trace_start"() <{level = 10 : i32, message = "bqs,bsh->bqh"}> : () -> ()
    %cst_10 = arith.constant dense<0.000000e+00> : vector<2x1x32xf32>
    %23 = tpu.matmul %22, %0, %cst_10 {dimension_numbers = #tpu.dot_dimension_numbers<[2], [1], [1], [2], [0, 0, 0, 1, 1, 2], [0], [0]>} : vector<2x1x8xf32>, vector<2x8x32xf32>, vector<2x1x32xf32> -> vector<2x1x32xf32>
    "tpu.trace_stop"() : () -> ()
    %24 = vector.shape_cast %23 : vector<2x1x32xf32> to vector<2x32xf32>
    %c0_11 = arith.constant 0 : index
    %c0_12 = arith.constant 0 : index
    %25 = vector.load %arg5[%c0_11, %c0_12] : memref<32x4xf32, #tpu.memory_space<vmem>>, vector<32x4xf32>
    %cst_13 = arith.constant dense<0.000000e+00> : vector<2x4xf32>
    %26 = tpu.matmul %24, %25, %cst_13 {dimension_numbers = #tpu.dot_dimension_numbers<[1], [0], [0], [1], [0, 0, 1, 1], [], []>} : vector<2x32xf32>, vector<32x4xf32>, vector<2x4xf32> -> vector<2x4xf32>
    %c0_14 = arith.constant 0 : index
    %c0_15 = arith.constant 0 : index
    %27 = vector.load %arg6[%c0_14, %c0_15] : memref<1x4xf32, #tpu.memory_space<vmem>>, vector<1x4xf32>
    %28 = vector.broadcast %27 : vector<1x4xf32> to vector<2x4xf32>
    %29 = arith.addf %26, %28 : vector<2x4xf32>
    %c0_16 = arith.constant 0 : index
    %c0_17 = arith.constant 0 : index
    %30 = vector.load %arg7[%c0_16, %c0_17] : memref<2x4xf32, #tpu.memory_space<vmem>>, vector<2x4xf32>
    tpu.vector_store %arg7[%c0_16, %c0_17], %29 {strides = array<i32>} : memref<2x4xf32, #tpu.memory_space<vmem>>, vector<2x4xf32>,
    return
  }
  func.func @transform_0(%arg0: i32) -> (i32, i32, i32) {
    %c0_i32 = arith.constant 0 : i32
    %c0_i32_0 = arith.constant 0 : i32
    %c0_i32_1 = arith.constant 0 : i32
    return %arg0, %c0_i32, %c0_i32_0 : i32, i32, i32
  }
  func.func @transform_1(%arg0: i32) -> (i32, i32) {
    %c0_i32 = arith.constant 0 : i32
    %c0_i32_0 = arith.constant 0 : i32
    return %arg0, %c0_i32 : i32, i32
  }
  func.func @transform_2(%arg0: i32) -> (i32, i32) {
    %c0_i32 = arith.constant 0 : i32
    %c0_i32_0 = arith.constant 0 : i32
    %c0_i32_1 = arith.constant 0 : i32
    return %c0_i32, %c0_i32_0 : i32, i32
  }
  func.func @transform_3(%arg0: i32) -> (i32, i32) {
    %c0_i32 = arith.constant 0 : i32
    %c0_i32_0 = arith.constant 0 : i32
    %c0_i32_1 = arith.constant 0 : i32
    return %c0_i32, %c0_i32_0 : i32, i32
  }
  func.func @transform_4(%arg0: i32) -> (i32, i32) {
    %c0_i32 = arith.constant 0 : i32
    %c0_i32_0 = arith.constant 0 : i32
    %c0_i32_1 = arith.constant 0 : i32
    return %c0_i32, %c0_i32_0 : i32, i32
  }
  func.func @transform_5(%arg0: i32) -> (i32, i32) {
    %c0_i32 = arith.constant 0 : i32
    %c0_i32_0 = arith.constant 0 : i32
    %c0_i32_1 = arith.constant 0 : i32
    return %c0_i32, %c0_i32_0 : i32, i32
  }
  func.func @transform_6(%arg0: i32) -> (i32, i32) {
    %c0_i32 = arith.constant 0 : i32
    %c0_i32_0 = arith.constant 0 : i32
    return %arg0, %c0_i32 : i32, i32
  }
}

</mosaic_0001>

<bundles_post_ra>
// kernel: tpu_custom_call.1
= control target key start
LH: loop header
LB: loop body
LE: loop exit
PB: predicated region body
PF: predicated region fallthrough
CT: control target
= control target key end

     0   :  { %vm28_vm0 = vcmask 261120   ;;  %s343_s0 = inlined_call_operand.vmem [shape: f32[2,8,32], index: 0, kind: input, shape index: {}]   ;;  %s344_s1 = inlined_call_operand.vmem [shape: f32[2,8], index: 1, kind: input, shape index: {}]   ;;  %s345_s2 = inlined_call_operand.vmem [shape: f32[1,32], index: 2, kind: input, shape index: {}]   ;;  %s346_s3 = inlined_call_operand.<no memory space> [shape: f32[1,1], index: 3, kind: input, shape index: {}]   ;;  %s347_s4 = inlined_call_operand.vmem [shape: f32[32,4], index: 4, kind: input, shape index: {}]   ;;  %s348_s5 = inlined_call_operand.vmem [shape: f32[1,4], index: 5, kind: input, shape index: {}]   ;;  %s349_s6 = inlined_call_operand.hbm [shape: f32[2,4], index: 6, kind: output, shape index: {}]  }
   0x1   :  { %v26_v0 = vld [vmem:[%s343_s0 + $0x8] sm:$0xff]  ;;  %v25_v1 = vld [vmem:[%s343_s0] sm:$0xff] }
   0x2   :  { %225 = vmatpush.xpose.msk.msra.mxu1 %vm28_vm0, %v26_v0  ;;  %223 = vmatpush.xpose.msk.msra.mxu0 %vm28_vm0, %v25_v1  ;;  %v27_v2 = vld [vmem:[%s345_s2] sm:$0x1] }
   0x3   :  { %12 = vsyncpa [#allocation4], 0  ;;  %143 = vmatpush.msra.mxu2 %v25_v1  ;;  %166 = vmatpush.msra.mxu3 %v26_v0  ;;  %v79_v3 = vstv %s346_s3  ;;  %vm85_vm1 = vcmask 1041409   ;;  %vm88_vm2 = vcmask 58368   ;;  %v174_v22 = vld [vmem:[%s347_s4 + $0x18] sm:$0xff]  ;;  %vm124_vm3 = vcmask 64512  }
   0x4   :  { %v117_v24 = vld [vmem:[%s344_s1] sm:$0x3]  ;;  %v173_v32 = vld [vmem:[%s347_s4 + $0x10] sm:$0xff]  ;;  %v172_v33 = vld [vmem:[%s347_s4 + $0x8] sm:$0xff]  ;;  %s264_s13 = smov [#allocation3]   ;;  %s214_s17 = sshll.u32 %s349_s6, 4  ;;  %s215_s17 = int_to_ptr.hbm [resolvable:$true] %s214_s17 }
   0x5   :  { %226 = vmatmul.msk.f32.vlgmr.msra.gmra.mxu1 %vm28_vm0, %v27_v2  ;;  %224 = vmatmul.msk.f32.vlgmr.msra.gmra.mxu0 %vm28_vm0, %v27_v2  ;;  %v119_v28 = vrot.slane %v117_v24, 1  ;;  %v171_v34 = vld [vmem:[%s347_s4] sm:$0xff]  ;;  %s212_s14 = sshll.u32 %s264_s13, 4  ;;  %vm205_vm4 = vcmask 25600   ;;  %s213_s14 = int_to_ptr.vmem [resolvable:$true] %s212_s14 }
   0x6   :  { %197 = vmatpush.msrb.mxu2 %v174_v22  ;;  %v231_v39 = vld [vmem:[%s348_s5] ss:$0 sm:$0xff] }
   0x8   :  { %198 = vmatpush.msrb.mxu2 %v173_v32 }
   0xa   :  { %199 = vmatpush.msrb.mxu2 %v172_v33 }
   0xc   :  { %200 = vmatpush.msrb.mxu2 %v171_v34 }
  0x82   :  { %v75_v4 = vpop.f32.mrf.mxu1  ;;  %v52_v5 = vpop.f32.mrf.mxu0 }
  0x83   :  { %v81_v6 = vadd.f32 %v79_v3, %v75_v4  ;;  %v80_v7 = vadd.f32 %v79_v3, %v52_v5 }
  0x85   :  { %v84_v8 = vrot.slane %v81_v6, 7 }
  0x87   :  { %v86_v9 = vsel %vm85_vm1, %v84_v8, %v80_v7 }
  0x88   :  { %v89_v10 = vsel %vm88_vm2, %v86_v9, -inf }
  0x89   :  { %90 = vmax.xlane.f32.xlu0 %v89_v10 }
  0xfc   :  { %v91_v11 = vpop.xlane.xlu0 %90 }
  0xfd   :  { %v93_v12 = vrot.slane %v91_v11, 1  ;;  %v96_v13 = vsub.f32 %v80_v7, %v91_v11 }
  0xff   :  { %v97_v14 = vsub.f32 %v81_v6, %v93_v12  ;;  %v98_v15 = vmul.f32 1.442695, %v96_v13 }
 0x101   :  { %v100_v16 = vmul.f32 1.442695, %v97_v14 }
 0x103   :  { %232 = vpow2.f32 %v100_v16 }
 0x104   :  { %234 = vpow2.f32 %v98_v15 }
 0x109   :  { %v233_v17 = vpop.eup %232 }
 0x10a   :  { %v104_v18 = vrot.slane %v233_v17, 7  ;;  %v235_v19 = vpop.eup %234 }
 0x10c   :  { %v105_v20 = vsel %vm85_vm1, %v104_v18, %v235_v19 }
 0x10d   :  { %v107_v21 = vsel %vm88_vm2, %v105_v20, 0.0 }
 0x10e   :  { %108 = vadd.xlane.f32.xlu0 %v107_v21 }
 0x181   :  { %v109_v23 = vpop.xlane.xlu0 %108 }
 0x182   :  { %236 = vrcp.f32 %v109_v23 }
 0x188   :  { %v237_v25 = vpop.eup %236 }
 0x189   :  { %v112_v26 = vrot.slane %v237_v25, 1  ;;  %v115_v27 = vmul.f32 %v237_v25, %v235_v19 }
 0x18b   :  { %v122_v29 = vmul.f32 %v117_v24, %v115_v27  ;;  %v116_v30 = vmul.f32 %v233_v17, %v112_v26 }
 0x18d   :  { %227 = vmatmul.msk.f32.vlgmr.msra.gmra.mxu2 %vm124_vm3, %v122_v29  ;;  %v123_v31 = vmul.f32 %v119_v28, %v116_v30 }
 0x18f   :  { %228 = vmatmul.msk.f32.vlgmr.msra.gmra.mxu3 %vm124_vm3, %v123_v31 }
 0x210   :  { %v145_v37 = vpop.f32.mrf.mxu2 }
 0x212   :  { %v168_v35 = vpop.f32.mrf.mxu3 }
 0x213   :  { %v181_v36 = vrot.slane %v168_v35, 7 }
 0x215   :  { %v182_v38 = vsel %vm85_vm1, %v181_v36, %v145_v37 }
 0x216   :  { %229 = vmatmul.msk.f32.vlgmr.msrb.gmra.mxu2 %vm28_vm0, %v182_v38 }
 0x299   :  { %v202_v40 = vpop.f32.mrf.mxu2 }
 0x29a   :  { %v203_v41 = vadd.f32 %v231_v39, %v202_v40 }
 0x29c   :  { %206 = vst.msk [vmem:[#allocation3] sm:$0x3] %vm205_vm4, %v203_v41 }
 0x29d   :  { %217 = dma.vmem_to_hbm [thread:$0]  %s213_s14, 32, %s215_s17, [#allocation4]  }
 0x29e   :  { %262 = dma.done.wait [#allocation4], 32  }
 0x29f   :  { %263 = vsyncadd [#allocation4], 4294967264 }
 0x2a0   :  { %222 = vsyncpa [#allocation4], 1 }

</bundles_post_ra>
